<compile_context>
chip_gen: v5e
topology: v5e:2x2
jax: 0.10.0
libtpu: 0.0.40
codegen_flags: <defaults>
</compile_context>

<pallas_src>
import functools
import math

import jax
import jax.numpy as jnp
from jax import lax
from jax.experimental import pallas as pl
from jax.experimental.pallas import tpu as pltpu


def _xyz_to_sincos_kernel(xyz_ref, th_ref, ph_ref, *, max_m, normalize_input,
                          component_normalize, eps):
    # Per-plane loads/casts: only a handful of (TS, 128) f32 slabs live at a time.
    x = xyz_ref[0].astype(jnp.float32)
    y = xyz_ref[1].astype(jnp.float32)
    z = xyz_ref[2].astype(jnp.float32)
    if normalize_input:
        inv_r = lax.rsqrt(x * x + y * y + z * z + eps)
        x, y, z = x * inv_r, y * inv_r, z * inv_r

    rho2 = x * x + y * y + eps
    inv_rho = lax.rsqrt(rho2)                 # EUP slot; avoids f32 divide
    rho = rho2 * inv_rho

    cos_t, sin_t = z, rho                     # polar angle theta (from +z axis)
    cos_p, sin_p = x * inv_rho, y * inv_rho   # azimuth phi (x-y plane)

    if component_normalize:
        # TODO(synk): equitorch's exact component_normalize semantics are
        # undocumented; here each (cos, sin) pair is renormalized to unit norm.
        if not normalize_input:
            # With normalize_input=True, cos_t^2 + sin_t^2 == 1 + O(eps) already.
            inv_t = lax.rsqrt(cos_t * cos_t + sin_t * sin_t + eps)
            cos_t, sin_t = cos_t * inv_t, sin_t * inv_t
        inv_p = lax.rsqrt(cos_p * cos_p + sin_p * sin_p + eps)
        cos_p, sin_p = cos_p * inv_p, sin_p * inv_p

    ones = jnp.ones_like(x)
    zeros = jnp.zeros_like(x)
    th_ref[max_m] = ones.astype(th_ref.dtype)
    ph_ref[max_m] = ones.astype(ph_ref.dtype)

    def emit(ref, c1, s1):
        # 2-term Chebyshev recursion:
        #   c_{m+1} = 2*c1*c_m - c_{m-1},  s_{m+1} = 2*c1*s_m - s_{m-1}
        # Rows are stored directly as produced (no concatenate / XLU shuffles).
        two_c1 = c1 + c1
        c_prev, s_prev = ones, zeros
        c_m, s_m = c1, s1
        for m in range(1, max_m + 1):
            ref[max_m + m] = c_m.astype(ref.dtype)
            ref[max_m - m] = s_m.astype(ref.dtype)
            if m < max_m:
                c_nxt = two_c1 * c_m - c_prev
                s_nxt = two_c1 * s_m - s_prev
                c_prev, s_prev = c_m, s_m
                c_m, s_m = c_nxt, s_nxt

    emit(th_ref, cos_t, sin_t)
    emit(ph_ref, cos_p, sin_p)


def _vmem_limit_bytes():
    """Generation-aware scoped-VMEM request (v5e/v6e 128 MiB, v7x 64 MiB physical)."""
    phys = 64 << 20  # conservative fallback (v7x physical per TC)
    try:
        phys = int(getattr(pltpu.get_tpu_info(), "vmem_capacity_bytes", phys))
    except Exception:
        pass
    return int(min((phys * 3) // 4, 48 << 20))


def xyz_to_sincos(xyz, max_m, normalize_input=True, component_normalize=False,
                  eps=1e-14, dim=-1, out_dtype=None, native_layout=False,
                  row_tile=1024):
    """Pallas XYZ -> sincos(theta), sincos(phi).

    row_tile: max sublane rows per grid step (each row = 128 points).
    out_dtype: output dtype (default: input dtype); math is always f32.
    native_layout: if True return (2*max_m+1, *batch_shape) — the kernel-native
      layout — skipping the epilogue transpose (a full extra HBM pass per output).
    """
    xyz_last = jnp.moveaxis(xyz, dim, -1)
    assert xyz_last.shape[-1] == 3, "coordinate dim must have size 3"
    batch_shape = xyz_last.shape[:-1]
    n = math.prod(batch_shape) if batch_shape else 1
    rows = 2 * max_m + 1
    out_dtype = jnp.dtype(out_dtype) if out_dtype is not None else xyz.dtype

    vmem_limit = _vmem_limit_bytes()
    # Double-buffered working set per sublane row: input (3,ts,128) + two outputs
    # (rows,ts,128), f32-conservative.  Keep it at <= half the scoped limit so
    # Mosaic's elementwise temporaries have headroom.
    bytes_per_row_db = 2 * 128 * 4 * (3 + 2 * rows)
    max_ts = max(8, ((vmem_limit // 2) // bytes_per_row_db // 8) * 8)

    s = pl.cdiv(n, 128)                       # sublane rows of work
    if s <= 8:
        ts = s                                # full-extent block (always legal)
        s_pad = s
    else:
        ts = max(8, (min(row_tile, max_ts) // 8) * 8)
        # At least two grid steps so both v7x TensorCores get work.
        half = ((pl.cdiv(s, 2) + 7) // 8) * 8
        ts = min(ts, half)
        s_pad = pl.cdiv(s, ts) * ts
    n_pad = s_pad * 128

    flat = xyz_last.reshape(n, 3).T           # (3, N) — small relative to outputs
    if n_pad != n:
        flat = jnp.pad(flat, ((0, 0), (0, n_pad - n)))
    flat3 = flat.reshape(3, s_pad, 128)

    kernel = functools.partial(
        _xyz_to_sincos_kernel, max_m=max_m, normalize_input=normalize_input,
        component_normalize=component_normalize, eps=float(eps))

    sc_t, sc_p = pl.pallas_call(
        kernel,
        out_shape=(jax.ShapeDtypeStruct((rows, s_pad, 128), out_dtype),
                   jax.ShapeDtypeStruct((rows, s_pad, 128), out_dtype)),
        grid_spec=pltpu.PrefetchScalarGridSpec(
            num_scalar_prefetch=0,
            grid=(s_pad // ts,),
            in_specs=[pl.BlockSpec((3, ts, 128), lambda i: (0, i, 0))],
            out_specs=[pl.BlockSpec((rows, ts, 128), lambda i: (0, i, 0)),
                       pl.BlockSpec((rows, ts, 128), lambda i: (0, i, 0))]),
        compiler_params=pltpu.CompilerParams(
            dimension_semantics=("parallel",),
            vmem_limit_bytes=vmem_limit),
    )(flat3)

    sc_t = sc_t.reshape(rows, n_pad)[:, :n]
    sc_p = sc_p.reshape(rows, n_pad)[:, :n]

    if native_layout:
        # Kernel-native layout: leading axis is m = -M..M.  No HBM transpose pass.
        return (sc_t.reshape(rows, *batch_shape),
                sc_p.reshape(rows, *batch_shape))

    # PyTorch-module layout: the size-3 `dim` axis becomes 2*max_m+1.
    # NOTE: this transpose is a full extra HBM pass per output; prefer
    # native_layout=True when the consumer can take (rows, ...).
    sc_t = sc_t.T.reshape(*batch_shape, rows)
    sc_p = sc_p.T.reshape(*batch_shape, rows)
    return jnp.moveaxis(sc_t, -1, dim), jnp.moveaxis(sc_p, -1, dim)


class XYZToSinCos:
    """JAX/Pallas equivalent of equitorch.nn.sphericals.XYZToSinCos (no parameters)."""

    def __init__(self, max_m, normalize_input=True, component_normalize=False,
                 eps=1e-14, dim=-1, out_dtype=None, native_layout=False):
        self.max_m = max_m
        self.normalize_input = normalize_input
        self.component_normalize = component_normalize
        self.eps = eps
        self.dim = dim
        self.out_dtype = out_dtype
        self.native_layout = native_layout   # False => PyTorch-compatible layout

    def __call__(self, xyz):
        return xyz_to_sincos(xyz, max_m=self.max_m,
                             normalize_input=self.normalize_input,
                             component_normalize=self.component_normalize,
                             eps=self.eps, dim=self.dim,
                             out_dtype=self.out_dtype,
                             native_layout=self.native_layout)


def _ref_xyz_to_sincos(xyz, max_m, normalize_input=True, eps=1e-14):
    """Pure-JAX reference (same math, last-axis layout)."""
    x, y, z = xyz[..., 0], xyz[..., 1], xyz[..., 2]
    if normalize_input:
        inv_r = lax.rsqrt(x * x + y * y + z * z + eps)
        x, y, z = x * inv_r, y * inv_r, z * inv_r
    rho = jnp.sqrt(x * x + y * y + eps)
    cos_t, sin_t = z, rho
    cos_p, sin_p = x / rho, y / rho

    def mult(c1, s1):
        sins, coss = [], []
        c_m, s_m = c1, s1
        for _ in range(1, max_m + 1):
            sins.append(s_m)
            coss.append(c_m)
            c_m, s_m = c_m * c1 - s_m * s1, s_m * c1 + c_m * s1
        return jnp.stack(sins[::-1] + [jnp.ones_like(c1)] + coss, axis=-1)

    return mult(cos_t, sin_t), mult(cos_p, sin_p)


if __name__ == "__main__":
    key = jax.random.PRNGKey(0)
    max_m = 4
    module = XYZToSinCos(max_m=max_m, normalize_input=True)

    # Test 1: small batch (n=128 points, single sublane row / single grid step).
    xyz = jax.random.normal(key, (2, 4, 16, 3), dtype=jnp.float32)
    sc_theta, sc_phi = module(xyz)
    jax.block_until_ready((sc_theta, sc_phi))
    assert sc_theta.shape == (2, 4, 16, 2 * max_m + 1)
    assert sc_phi.shape == (2, 4, 16, 2 * max_m + 1)
    ref_theta, ref_phi = _ref_xyz_to_sincos(xyz, max_m=max_m, normalize_input=True)
    assert jnp.allclose(sc_theta, ref_theta, atol=1e-4, rtol=1e-4)
    assert jnp.allclose(sc_phi, ref_phi, atol=1e-4, rtol=1e-4)

    # Test 2: ragged size (lane padding) + coordinate axis at dim=0.
    xyz2 = jax.random.normal(jax.random.PRNGKey(1), (3, 5, 7), dtype=jnp.float32)
    mod2 = XYZToSinCos(max_m=2, normalize_input=True, dim=0)
    t2, p2 = mod2(xyz2)
    jax.block_until_ready((t2, p2))
    assert t2.shape == (5, 5, 7) and p2.shape == (5, 5, 7)
    rt2, rp2 = _ref_xyz_to_sincos(jnp.moveaxis(xyz2, 0, -1), max_m=2)
    assert jnp.allclose(jnp.moveaxis(t2, 0, -1), rt2, atol=1e-4, rtol=1e-4)
    assert jnp.allclose(jnp.moveaxis(p2, 0, -1), rp2, atol=1e-4, rtol=1e-4)

    # Test 3: multi-step grid (>8 sublane rows => at least 2 grid steps) +
    # native (rows-first) layout path that skips the epilogue transpose.
    xyz3 = jax.random.normal(jax.random.PRNGKey(2), (2, 20, 64, 3), dtype=jnp.float32)
    t3, p3 = xyz_to_sincos(xyz3, max_m=3, native_layout=True)
    jax.block_until_ready((t3, p3))
    assert t3.shape == (7, 2, 20, 64) and p3.shape == (7, 2, 20, 64)
    rt3, rp3 = _ref_xyz_to_sincos(xyz3, max_m=3)
    assert jnp.allclose(jnp.moveaxis(t3, 0, -1), rt3, atol=1e-4, rtol=1e-4)
    assert jnp.allclose(jnp.moveaxis(p3, 0, -1), rp3, atol=1e-4, rtol=1e-4)

    # Test 4: bf16 output dtype (math stays f32; only stores are narrowed).
    t4, p4 = xyz_to_sincos(xyz, max_m=max_m, out_dtype=jnp.bfloat16)
    jax.block_until_ready((t4, p4))
    assert t4.dtype == jnp.bfloat16 and p4.dtype == jnp.bfloat16
    assert jnp.allclose(t4.astype(jnp.float32), ref_theta, atol=3e-2)
    assert jnp.allclose(p4.astype(jnp.float32), ref_phi, atol=3e-2)

    print("KERNEL_OK")
</pallas_src>

<mosaic_0001>
module attributes {stable_mosaic.version = 11 : i64} {
  func.func @_xyz_to_sincos_kernel(%arg0: i32, %arg1: memref<3x1x128xf32, #tpu.memory_space<vmem>>, %arg2: memref<9x1x128xf32, #tpu.memory_space<vmem>>, %arg3: memref<9x1x128xf32, #tpu.memory_space<vmem>>) attributes {dimension_semantics = [#tpu.dimension_semantics<parallel>], iteration_bounds = array<i64: 1>, scalar_prefetch = 0 : i64, scratch_operands = 0 : i64, tpu.core_type = #tpu.core_type<tc>, window_params = [{transform_indices = @transform_0, window_bounds = array<i64: 3, 1, 128>}, {transform_indices = @transform_1, window_bounds = array<i64: 9, 1, 128>}, {transform_indices = @transform_2, window_bounds = array<i64: 9, 1, 128>}]} {
    %c0 = arith.constant 0 : index
    %c0_0 = arith.constant 0 : index
    %c0_1 = arith.constant 0 : index
    %0 = vector.load %arg1[%c0, %c0_0, %c0_1] : memref<3x1x128xf32, #tpu.memory_space<vmem>>, vector<1x1x128xf32>
    %1 = vector.shape_cast %0 : vector<1x1x128xf32> to vector<1x128xf32>
    %c1 = arith.constant 1 : index
    %c0_2 = arith.constant 0 : index
    %c0_3 = arith.constant 0 : index
    %2 = vector.load %arg1[%c1, %c0_2, %c0_3] : memref<3x1x128xf32, #tpu.memory_space<vmem>>, vector<1x1x128xf32>
    %3 = vector.shape_cast %2 : vector<1x1x128xf32> to vector<1x128xf32>
    %c2 = arith.constant 2 : index
    %c0_4 = arith.constant 0 : index
    %c0_5 = arith.constant 0 : index
    %4 = vector.load %arg1[%c2, %c0_4, %c0_5] : memref<3x1x128xf32, #tpu.memory_space<vmem>>, vector<1x1x128xf32>
    %5 = vector.shape_cast %4 : vector<1x1x128xf32> to vector<1x128xf32>
    %6 = arith.mulf %1, %1 : vector<1x128xf32>
    %7 = arith.mulf %3, %3 : vector<1x128xf32>
    %8 = arith.addf %6, %7 : vector<1x128xf32>
    %9 = arith.mulf %5, %5 : vector<1x128xf32>
    %10 = arith.addf %8, %9 : vector<1x128xf32>
    %cst = arith.constant 9.99999982E-15 : f32
    %11 = vector.broadcast %cst : f32 to vector<1x128xf32>
    %12 = arith.addf %10, %11 : vector<1x128xf32>
    %13 = math.rsqrt %12 : vector<1x128xf32>
    %14 = arith.mulf %1, %13 : vector<1x128xf32>
    %15 = arith.mulf %3, %13 : vector<1x128xf32>
    %16 = arith.mulf %5, %13 : vector<1x128xf32>
    %17 = arith.mulf %14, %14 : vector<1x128xf32>
    %18 = arith.mulf %15, %15 : vector<1x128xf32>
    %19 = arith.addf %17, %18 : vector<1x128xf32>
    %cst_6 = arith.constant 9.99999982E-15 : f32
    %20 = vector.broadcast %cst_6 : f32 to vector<1x128xf32>
    %21 = arith.addf %19, %20 : vector<1x128xf32>
    %22 = math.rsqrt %21 : vector<1x128xf32>
    %23 = arith.mulf %21, %22 : vector<1x128xf32>
    %24 = arith.mulf %14, %22 : vector<1x128xf32>
    %25 = arith.mulf %15, %22 : vector<1x128xf32>
    %cst_7 = arith.constant 1.000000e+00 : f32
    %26 = vector.broadcast %cst_7 : f32 to vector<1x128xf32>
    %cst_8 = arith.constant 0.000000e+00 : f32
    %27 = vector.broadcast %cst_8 : f32 to vector<1x128xf32>
    %c4 = arith.constant 4 : index
    %c0_9 = arith.constant 0 : index
    %c0_10 = arith.constant 0 : index
    %28 = vector.load %arg2[%c4, %c0_9, %c0_10] : memref<9x1x128xf32, #tpu.memory_space<vmem>>, vector<1x1x128xf32>
    %29 = vector.shape_cast %28 : vector<1x1x128xf32> to vector<1x128xf32>
    %30 = vector.shape_cast %26 : vector<1x128xf32> to vector<1x1x128xf32>
    tpu.vector_store %arg2[%c4, %c0_9, %c0_10], %30 {strides = array<i32>} : memref<9x1x128xf32, #tpu.memory_space<vmem>>, vector<1x1x128xf32>,
    %c4_11 = arith.constant 4 : index
    %c0_12 = arith.constant 0 : index
    %c0_13 = arith.constant 0 : index
    %31 = vector.load %arg3[%c4_11, %c0_12, %c0_13] : memref<9x1x128xf32, #tpu.memory_space<vmem>>, vector<1x1x128xf32>
    %32 = vector.shape_cast %31 : vector<1x1x128xf32> to vector<1x128xf32>
    %33 = vector.shape_cast %26 : vector<1x128xf32> to vector<1x1x128xf32>
    tpu.vector_store %arg3[%c4_11, %c0_12, %c0_13], %33 {strides = array<i32>} : memref<9x1x128xf32, #tpu.memory_space<vmem>>, vector<1x1x128xf32>,
    %34 = arith.addf %16, %16 : vector<1x128xf32>
    %c5 = arith.constant 5 : index
    %c0_14 = arith.constant 0 : index
    %c0_15 = arith.constant 0 : index
    %35 = vector.load %arg2[%c5, %c0_14, %c0_15] : memref<9x1x128xf32, #tpu.memory_space<vmem>>, vector<1x1x128xf32>
    %36 = vector.shape_cast %35 : vector<1x1x128xf32> to vector<1x128xf32>
    %37 = vector.shape_cast %16 : vector<1x128xf32> to vector<1x1x128xf32>
    tpu.vector_store %arg2[%c5, %c0_14, %c0_15], %37 {strides = array<i32>} : memref<9x1x128xf32, #tpu.memory_space<vmem>>, vector<1x1x128xf32>,
    %c3 = arith.constant 3 : index
    %c0_16 = arith.constant 0 : index
    %c0_17 = arith.constant 0 : index
    %38 = vector.load %arg2[%c3, %c0_16, %c0_17] : memref<9x1x128xf32, #tpu.memory_space<vmem>>, vector<1x1x128xf32>
    %39 = vector.shape_cast %38 : vector<1x1x128xf32> to vector<1x128xf32>
    %40 = vector.shape_cast %23 : vector<1x128xf32> to vector<1x1x128xf32>
    tpu.vector_store %arg2[%c3, %c0_16, %c0_17], %40 {strides = array<i32>} : memref<9x1x128xf32, #tpu.memory_space<vmem>>, vector<1x1x128xf32>,
    %41 = arith.mulf %34, %16 : vector<1x128xf32>
    %42 = arith.subf %41, %26 : vector<1x128xf32>
    %43 = arith.mulf %34, %23 : vector<1x128xf32>
    %44 = arith.subf %43, %27 : vector<1x128xf32>
    %c6 = arith.constant 6 : index
    %c0_18 = arith.constant 0 : index
    %c0_19 = arith.constant 0 : index
    %45 = vector.load %arg2[%c6, %c0_18, %c0_19] : memref<9x1x128xf32, #tpu.memory_space<vmem>>, vector<1x1x128xf32>
    %46 = vector.shape_cast %45 : vector<1x1x128xf32> to vector<1x128xf32>
    %47 = vector.shape_cast %42 : vector<1x128xf32> to vector<1x1x128xf32>
    tpu.vector_store %arg2[%c6, %c0_18, %c0_19], %47 {strides = array<i32>} : memref<9x1x128xf32, #tpu.memory_space<vmem>>, vector<1x1x128xf32>,
    %c2_20 = arith.constant 2 : index
    %c0_21 = arith.constant 0 : index
    %c0_22 = arith.constant 0 : index
    %48 = vector.load %arg2[%c2_20, %c0_21, %c0_22] : memref<9x1x128xf32, #tpu.memory_space<vmem>>, vector<1x1x128xf32>
    %49 = vector.shape_cast %48 : vector<1x1x128xf32> to vector<1x128xf32>
    %50 = vector.shape_cast %44 : vector<1x128xf32> to vector<1x1x128xf32>
    tpu.vector_store %arg2[%c2_20, %c0_21, %c0_22], %50 {strides = array<i32>} : memref<9x1x128xf32, #tpu.memory_space<vmem>>, vector<1x1x128xf32>,
    %51 = arith.mulf %34, %42 : vector<1x128xf32>
    %52 = arith.subf %51, %16 : vector<1x128xf32>
    %53 = arith.mulf %34, %44 : vector<1x128xf32>
    %54 = arith.subf %53, %23 : vector<1x128xf32>
    %c7 = arith.constant 7 : index
    %c0_23 = arith.constant 0 : index
    %c0_24 = arith.constant 0 : index
    %55 = vector.load %arg2[%c7, %c0_23, %c0_24] : memref<9x1x128xf32, #tpu.memory_space<vmem>>, vector<1x1x128xf32>
    %56 = vector.shape_cast %55 : vector<1x1x128xf32> to vector<1x128xf32>
    %57 = vector.shape_cast %52 : vector<1x128xf32> to vector<1x1x128xf32>
    tpu.vector_store %arg2[%c7, %c0_23, %c0_24], %57 {strides = array<i32>} : memref<9x1x128xf32, #tpu.memory_space<vmem>>, vector<1x1x128xf32>,
    %c1_25 = arith.constant 1 : index
    %c0_26 = arith.constant 0 : index
    %c0_27 = arith.constant 0 : index
    %58 = vector.load %arg2[%c1_25, %c0_26, %c0_27] : memref<9x1x128xf32, #tpu.memory_space<vmem>>, vector<1x1x128xf32>
    %59 = vector.shape_cast %58 : vector<1x1x128xf32> to vector<1x128xf32>
    %60 = vector.shape_cast %54 : vector<1x128xf32> to vector<1x1x128xf32>
    tpu.vector_store %arg2[%c1_25, %c0_26, %c0_27], %60 {strides = array<i32>} : memref<9x1x128xf32, #tpu.memory_space<vmem>>, vector<1x1x128xf32>,
    %61 = arith.mulf %34, %52 : vector<1x128xf32>
    %62 = arith.subf %61, %42 : vector<1x128xf32>
    %63 = arith.mulf %34, %54 : vector<1x128xf32>
    %64 = arith.subf %63, %44 : vector<1x128xf32>
    %c8 = arith.constant 8 : index
    %c0_28 = arith.constant 0 : index
    %c0_29 = arith.constant 0 : index
    %65 = vector.load %arg2[%c8, %c0_28, %c0_29] : memref<9x1x128xf32, #tpu.memory_space<vmem>>, vector<1x1x128xf32>
    %66 = vector.shape_cast %65 : vector<1x1x128xf32> to vector<1x128xf32>
    %67 = vector.shape_cast %62 : vector<1x128xf32> to vector<1x1x128xf32>
    tpu.vector_store %arg2[%c8, %c0_28, %c0_29], %67 {strides = array<i32>} : memref<9x1x128xf32, #tpu.memory_space<vmem>>, vector<1x1x128xf32>,
    %c0_30 = arith.constant 0 : index
    %c0_31 = arith.constant 0 : index
    %c0_32 = arith.constant 0 : index
    %68 = vector.load %arg2[%c0_30, %c0_31, %c0_32] : memref<9x1x128xf32, #tpu.memory_space<vmem>>, vector<1x1x128xf32>
    %69 = vector.shape_cast %68 : vector<1x1x128xf32> to vector<1x128xf32>
    %70 = vector.shape_cast %64 : vector<1x128xf32> to vector<1x1x128xf32>
    tpu.vector_store %arg2[%c0_30, %c0_31, %c0_32], %70 {strides = array<i32>} : memref<9x1x128xf32, #tpu.memory_space<vmem>>, vector<1x1x128xf32>,
    %71 = arith.addf %24, %24 : vector<1x128xf32>
    %c5_33 = arith.constant 5 : index
    %c0_34 = arith.constant 0 : index
    %c0_35 = arith.constant 0 : index
    %72 = vector.load %arg3[%c5_33, %c0_34, %c0_35] : memref<9x1x128xf32, #tpu.memory_space<vmem>>, vector<1x1x128xf32>
    %73 = vector.shape_cast %72 : vector<1x1x128xf32> to vector<1x128xf32>
    %74 = vector.shape_cast %24 : vector<1x128xf32> to vector<1x1x128xf32>
    tpu.vector_store %arg3[%c5_33, %c0_34, %c0_35], %74 {strides = array<i32>} : memref<9x1x128xf32, #tpu.memory_space<vmem>>, vector<1x1x128xf32>,
    %c3_36 = arith.constant 3 : index
    %c0_37 = arith.constant 0 : index
    %c0_38 = arith.constant 0 : index
    %75 = vector.load %arg3[%c3_36, %c0_37, %c0_38] : memref<9x1x128xf32, #tpu.memory_space<vmem>>, vector<1x1x128xf32>
    %76 = vector.shape_cast %75 : vector<1x1x128xf32> to vector<1x128xf32>
    %77 = vector.shape_cast %25 : vector<1x128xf32> to vector<1x1x128xf32>
    tpu.vector_store %arg3[%c3_36, %c0_37, %c0_38], %77 {strides = array<i32>} : memref<9x1x128xf32, #tpu.memory_space<vmem>>, vector<1x1x128xf32>,
    %78 = arith.mulf %71, %24 : vector<1x128xf32>
    %79 = arith.subf %78, %26 : vector<1x128xf32>
    %80 = arith.mulf %71, %25 : vector<1x128xf32>
    %81 = arith.subf %80, %27 : vector<1x128xf32>
    %c6_39 = arith.constant 6 : index
    %c0_40 = arith.constant 0 : index
    %c0_41 = arith.constant 0 : index
    %82 = vector.load %arg3[%c6_39, %c0_40, %c0_41] : memref<9x1x128xf32, #tpu.memory_space<vmem>>, vector<1x1x128xf32>
    %83 = vector.shape_cast %82 : vector<1x1x128xf32> to vector<1x128xf32>
    %84 = vector.shape_cast %79 : vector<1x128xf32> to vector<1x1x128xf32>
    tpu.vector_store %arg3[%c6_39, %c0_40, %c0_41], %84 {strides = array<i32>} : memref<9x1x128xf32, #tpu.memory_space<vmem>>, vector<1x1x128xf32>,
    %c2_42 = arith.constant 2 : index
    %c0_43 = arith.constant 0 : index
    %c0_44 = arith.constant 0 : index
    %85 = vector.load %arg3[%c2_42, %c0_43, %c0_44] : memref<9x1x128xf32, #tpu.memory_space<vmem>>, vector<1x1x128xf32>
    %86 = vector.shape_cast %85 : vector<1x1x128xf32> to vector<1x128xf32>
    %87 = vector.shape_cast %81 : vector<1x128xf32> to vector<1x1x128xf32>
    tpu.vector_store %arg3[%c2_42, %c0_43, %c0_44], %87 {strides = array<i32>} : memref<9x1x128xf32, #tpu.memory_space<vmem>>, vector<1x1x128xf32>,
    %88 = arith.mulf %71, %79 : vector<1x128xf32>
    %89 = arith.subf %88, %24 : vector<1x128xf32>
    %90 = arith.mulf %71, %81 : vector<1x128xf32>
    %91 = arith.subf %90, %25 : vector<1x128xf32>
    %c7_45 = arith.constant 7 : index
    %c0_46 = arith.constant 0 : index
    %c0_47 = arith.constant 0 : index
    %92 = vector.load %arg3[%c7_45, %c0_46, %c0_47] : memref<9x1x128xf32, #tpu.memory_space<vmem>>, vector<1x1x128xf32>
    %93 = vector.shape_cast %92 : vector<1x1x128xf32> to vector<1x128xf32>
    %94 = vector.shape_cast %89 : vector<1x128xf32> to vector<1x1x128xf32>
    tpu.vector_store %arg3[%c7_45, %c0_46, %c0_47], %94 {strides = array<i32>} : memref<9x1x128xf32, #tpu.memory_space<vmem>>, vector<1x1x128xf32>,
    %c1_48 = arith.constant 1 : index
    %c0_49 = arith.constant 0 : index
    %c0_50 = arith.constant 0 : index
    %95 = vector.load %arg3[%c1_48, %c0_49, %c0_50] : memref<9x1x128xf32, #tpu.memory_space<vmem>>, vector<1x1x128xf32>
    %96 = vector.shape_cast %95 : vector<1x1x128xf32> to vector<1x128xf32>
    %97 = vector.shape_cast %91 : vector<1x128xf32> to vector<1x1x128xf32>
    tpu.vector_store %arg3[%c1_48, %c0_49, %c0_50], %97 {strides = array<i32>} : memref<9x1x128xf32, #tpu.memory_space<vmem>>, vector<1x1x128xf32>,
    %98 = arith.mulf %71, %89 : vector<1x128xf32>
    %99 = arith.subf %98, %79 : vector<1x128xf32>
    %100 = arith.mulf %71, %91 : vector<1x128xf32>
    %101 = arith.subf %100, %81 : vector<1x128xf32>
    %c8_51 = arith.constant 8 : index
    %c0_52 = arith.constant 0 : index
    %c0_53 = arith.constant 0 : index
    %102 = vector.load %arg3[%c8_51, %c0_52, %c0_53] : memref<9x1x128xf32, #tpu.memory_space<vmem>>, vector<1x1x128xf32>
    %103 = vector.shape_cast %102 : vector<1x1x128xf32> to vector<1x128xf32>
    %104 = vector.shape_cast %99 : vector<1x128xf32> to vector<1x1x128xf32>
    tpu.vector_store %arg3[%c8_51, %c0_52, %c0_53], %104 {strides = array<i32>} : memref<9x1x128xf32, #tpu.memory_space<vmem>>, vector<1x1x128xf32>,
    %c0_54 = arith.constant 0 : index
    %c0_55 = arith.constant 0 : index
    %c0_56 = arith.constant 0 : index
    %105 = vector.load %arg3[%c0_54, %c0_55, %c0_56] : memref<9x1x128xf32, #tpu.memory_space<vmem>>, vector<1x1x128xf32>
    %106 = vector.shape_cast %105 : vector<1x1x128xf32> to vector<1x128xf32>
    %107 = vector.shape_cast %101 : vector<1x128xf32> to vector<1x1x128xf32>
    tpu.vector_store %arg3[%c0_54, %c0_55, %c0_56], %107 {strides = array<i32>} : memref<9x1x128xf32, #tpu.memory_space<vmem>>, vector<1x1x128xf32>,
    return
  }
  func.func @transform_0(%arg0: i32) -> (i32, i32, i32) {
    %c0_i32 = arith.constant 0 : i32
    %c0_i32_0 = arith.constant 0 : i32
    %c0_i32_1 = arith.constant 0 : i32
    return %c0_i32, %arg0, %c0_i32_0 : i32, i32, i32
  }
  func.func @transform_1(%arg0: i32) -> (i32, i32, i32) {
    %c0_i32 = arith.constant 0 : i32
    %c0_i32_0 = arith.constant 0 : i32
    %c0_i32_1 = arith.constant 0 : i32
    return %c0_i32, %arg0, %c0_i32_0 : i32, i32, i32
  }
  func.func @transform_2(%arg0: i32) -> (i32, i32, i32) {
    %c0_i32 = arith.constant 0 : i32
    %c0_i32_0 = arith.constant 0 : i32
    %c0_i32_1 = arith.constant 0 : i32
    return %c0_i32, %arg0, %c0_i32_0 : i32, i32, i32
  }
}

</mosaic_0001>

<bundles_post_ra>
// kernel: tpu_custom_call.1
= control target key start
LH: loop header
LB: loop body
LE: loop exit
PB: predicated region body
PF: predicated region fallthrough
CT: control target
= control target key end

     0   :  { %8 = vsyncpa [#allocation3], 0  ;;  %s293_s0 = inlined_call_operand.hbm [shape: f32[3,1,128], index: 0, kind: input, shape index: {}]   ;;  %s294_s1 = inlined_call_operand.hbm [shape: f32[9,1,128], index: 1, kind: output, shape index: {0}]   ;;  %s295_s2 = inlined_call_operand.hbm [shape: f32[9,1,128], index: 2, kind: output, shape index: {1}]  }
   0x1   :  { %9 = vsyncpa [#allocation4], 0 }
   0x2   :  { %10 = vsyncpa [#allocation7], 0  ;;  %s15_s11 = sshll.u32 %s293_s0, 4  ;;  %s254_s12 = smov [#allocation2]   ;;  %s16_s11 = int_to_ptr.hbm [resolvable:$true] %s15_s11 }
   0x3   :  { %s17_s13 = sshll.u32 %s254_s12, 4  ;;  %s255_s14 = smov 16   ;;  %s18_s13 = int_to_ptr.vmem [resolvable:$true] %s17_s13 }
   0x4   :  { %s256_s15 = smov 1  }
   0x5   :  { %23 = dma.hbm_to_vmem [thread:$0]  %s16_s11, 48, %s18_s13, [#allocation3], %s255_s14, %s255_s14, %s256_s15  }
   0x6   :  { %248 = dma.done.wait [#allocation3], 48  }
   0x7   :  { %249 = vsyncadd [#allocation3], 4294967248  ;;  %v257_v0 = vmov 1.0   ;;  %v28_v1 = vld [vmem:[#allocation2] sm:$0x1]  ;;  %s258_s0 = smov [#allocation5]  }
   0x8   :  { %70 = vst [vmem:[#allocation5 + $0x4] sm:$0x1] %v257_v0  ;;  %v30_v2 = vld [vmem:[#allocation2 + $0x1] sm:$0x1]  ;;  %v32_v3 = vld [vmem:[#allocation2 + $0x2] sm:$0x1]  ;;  %v33_v4 = vmul.f32 %v28_v1, %v28_v1 }
   0x9   :  { %72 = vst [vmem:[#allocation6 + $0x4] sm:$0x1] %v257_v0  ;;  %v34_v5 = vmul.f32 %v30_v2, %v30_v2  ;;  %v36_v6 = vmul.f32 %v32_v3, %v32_v3  ;;  %s131_s16 = sshll.u32 %s258_s0, 4  ;;  %s133_s19 = sshll.u32 %s294_s1, 4  ;;  %s132_s16 = int_to_ptr.vmem [resolvable:$true] %s131_s16  ;;  %s134_s19 = int_to_ptr.hbm [resolvable:$true] %s133_s19 }
   0xa   :  { %s259_s20 = smov [#allocation6]   ;;  %s146_s24 = sshll.u32 %s295_s2, 4  ;;  %s147_s24 = int_to_ptr.hbm [resolvable:$true] %s146_s24 }
   0xb   :  { %v35_v7 = vadd.f32 %v34_v5, %v33_v4  ;;  %s144_s21 = sshll.u32 %s259_s20, 4  ;;  %s145_s21 = int_to_ptr.vmem [resolvable:$true] %s144_s21 }
   0xd   :  { %v37_v8 = vadd.f32 %v36_v6, %v35_v7 }
   0xf   :  { %v38_v9 = vadd.f32 1e-14, %v37_v8 }
  0x11   :  { %172 = vrsqrt.f32 %v38_v9  ;;  %vm45_vm0 = vweird.f32 %v38_v9 }
  0x17   :  { %v173_v10 = vpop.eup %172 }
  0x18   :  { %v40_v11 = vmul.f32 %v173_v10, %v38_v9  ;;  %vm46_vm1 = vweird.f32 %v173_v10 }
  0x19   :  { %vm47_vm2 = vmor %vm45_vm0, %vm46_vm1 }
  0x1a   :  { %v41_v12 = vmul.f32 %v173_v10, %v40_v11 }
  0x1c   :  { %v42_v13 = vmul.f32 0.5, %v41_v12 }
  0x1e   :  { %v43_v14 = vsub.f32 1.5, %v42_v13 }
  0x20   :  { %v44_v15 = vmul.f32 %v173_v10, %v43_v14 }
  0x22   :  { %v48_v16 = vsel %vm47_vm2, %v173_v10, %v44_v15 }
  0x23   :  { %v49_v17 = vmul.f32 %v48_v16, %v28_v1  ;;  %v50_v18 = vmul.f32 %v48_v16, %v30_v2  ;;  %v51_v19 = vmul.f32 %v48_v16, %v32_v3 }
  0x25   :  { %v52_v20 = vmul.f32 %v49_v17, %v49_v17  ;;  %v53_v21 = vmul.f32 %v50_v18, %v50_v18  ;;  %v73_v22 = vadd.f32 %v51_v19, %v51_v19  ;;  %75 = vst [vmem:[#allocation5 + $0x5] sm:$0x1] %v51_v19 }
  0x27   :  { %v54_v23 = vadd.f32 %v53_v21, %v52_v20  ;;  %v78_v24 = vmul.f32 %v73_v22, %v51_v19 }
  0x29   :  { %v55_v25 = vadd.f32 1e-14, %v54_v23  ;;  %v164_v26 = vadd.f32 -1.0, %v78_v24 }
  0x2b   :  { %174 = vrsqrt.f32 %v55_v25  ;;  %82 = vst [vmem:[#allocation5 + $0x6] sm:$0x1] %v164_v26  ;;  %v85_v27 = vmul.f32 %v164_v26, %v73_v22  ;;  %vm62_vm3 = vweird.f32 %v55_v25 }
  0x2d   :  { %v86_v28 = vsub.f32 %v85_v27, %v51_v19 }
  0x2f   :  { %90 = vst [vmem:[#allocation5 + $0x7] sm:$0x1] %v86_v28  ;;  %v93_v29 = vmul.f32 %v86_v28, %v73_v22 }
  0x31   :  { %v175_v30 = vpop.eup %174  ;;  %v94_v31 = vsub.f32 %v93_v29, %v164_v26 }
  0x32   :  { %v57_v32 = vmul.f32 %v175_v30, %v55_v25  ;;  %vm63_vm4 = vweird.f32 %v175_v30 }
  0x33   :  { %98 = vst [vmem:[#allocation5 + $0x8] sm:$0x1] %v94_v31  ;;  %vm64_vm5 = vmor %vm62_vm3, %vm63_vm4 }
  0x34   :  { %v58_v33 = vmul.f32 %v175_v30, %v57_v32 }
  0x36   :  { %v59_v34 = vmul.f32 0.5, %v58_v33 }
  0x38   :  { %v60_v35 = vsub.f32 1.5, %v59_v34 }
  0x3a   :  { %v61_v36 = vmul.f32 %v175_v30, %v60_v35 }
  0x3c   :  { %v65_v37 = vsel %vm64_vm5, %v175_v30, %v61_v36 }
  0x3d   :  { %v66_v38 = vmul.f32 %v65_v37, %v55_v25  ;;  %v67_v39 = vmul.f32 %v65_v37, %v49_v17  ;;  %v68_v40 = vmul.f32 %v65_v37, %v50_v18 }
  0x3f   :  { %77 = vst [vmem:[#allocation5 + $0x3] sm:$0x1] %v66_v38  ;;  %v80_v41 = vmul.f32 %v73_v22, %v66_v38  ;;  %v100_v42 = vadd.f32 %v67_v39, %v67_v39 }
  0x40   :  { %102 = vst [vmem:[#allocation6 + $0x5] sm:$0x1] %v67_v39 }
  0x41   :  { %84 = vst [vmem:[#allocation5 + $0x2] sm:$0x1] %v80_v41  ;;  %v87_v43 = vmul.f32 %v80_v41, %v73_v22  ;;  %v105_v44 = vmul.f32 %v100_v42, %v67_v39  ;;  %v107_v45 = vmul.f32 %v100_v42, %v68_v40 }
  0x42   :  { %104 = vst [vmem:[#allocation6 + $0x3] sm:$0x1] %v68_v40 }
  0x43   :  { %v88_v46 = vsub.f32 %v87_v43, %v66_v38  ;;  %v165_v47 = vadd.f32 -1.0, %v105_v44  ;;  %111 = vst [vmem:[#allocation6 + $0x2] sm:$0x1] %v107_v45  ;;  %v114_v48 = vmul.f32 %v107_v45, %v100_v42 }
  0x45   :  { %92 = vst [vmem:[#allocation5 + $0x1] sm:$0x1] %v88_v46  ;;  %v95_v49 = vmul.f32 %v88_v46, %v73_v22  ;;  %v112_v50 = vmul.f32 %v165_v47, %v100_v42  ;;  %v115_v51 = vsub.f32 %v114_v48, %v68_v40 }
  0x46   :  { %109 = vst [vmem:[#allocation6 + $0x6] sm:$0x1] %v165_v47 }
  0x47   :  { %v96_v52 = vsub.f32 %v95_v49, %v80_v41  ;;  %v113_v53 = vsub.f32 %v112_v50, %v67_v39  ;;  %119 = vst [vmem:[#allocation6 + $0x1] sm:$0x1] %v115_v51  ;;  %v122_v54 = vmul.f32 %v115_v51, %v100_v42 }
  0x49   :  { %99 = vst [vmem:[#allocation5] sm:$0x1] %v96_v52  ;;  %v120_v55 = vmul.f32 %v113_v53, %v100_v42  ;;  %v123_v56 = vsub.f32 %v122_v54, %v107_v45 }
  0x4a   :  { %117 = vst [vmem:[#allocation6 + $0x7] sm:$0x1] %v113_v53  ;;  %139 = dma.vmem_to_hbm [thread:$0]  %s132_s16, 144, %s134_s19, [#allocation4], %s255_s14, %s255_s14, %s256_s15  }
  0x4b   :  { %v121_v57 = vsub.f32 %v120_v55, %v165_v47  ;;  %126 = vst [vmem:[#allocation6] sm:$0x1] %v123_v56 }
  0x4d   :  { %125 = vst [vmem:[#allocation6 + $0x8] sm:$0x1] %v121_v57 }
  0x4e   :  { %152 = dma.vmem_to_hbm [thread:$0]  %s145_s21, 144, %s147_s24, [#allocation7], %s255_s14, %s255_s14, %s256_s15  }
  0x4f   :  { %250 = dma.done.wait [#allocation4], 144  }
  0x50   :  { %251 = vsyncadd [#allocation4], 4294967152 }
  0x51   :  { %252 = dma.done.wait [#allocation7], 144  }
  0x52   :  { %253 = vsyncadd [#allocation7], 4294967152 }
  0x53   :  { %161 = vsyncpa [#allocation3], 1 }
  0x54   :  { %162 = vsyncpa [#allocation4], 1 }
  0x55   :  { %163 = vsyncpa [#allocation7], 1 }

</bundles_post_ra>
